<compile_context>
chip_gen: v7x
topology: tpu7x:2x2x1
jax: 0.10.0
libtpu: 0.0.40
codegen_flags: <defaults>
</compile_context>

<pallas_src>
import functools
import re

import jax
import jax.numpy as jnp
from jax.experimental import pallas as pl
from jax.experimental.pallas import tpu as pltpu


def _grain_kernel_split(scal_ref, df_ref, lap_ref, out_ref):
    # scal_ref: SMEM (2,) f32 -> [0] = -dtime*|L|, [1] = -dtime*|L|*|kappa|
    # df_ref / lap_ref: VMEM (TB, HW) lane-dense channel tiles (input dtype)
    # out_ref: VMEM (TB, HW) f32
    c0 = scal_ref[0]
    c1 = scal_ref[1]
    out_ref[...] = (c0 * df_ref[...].astype(jnp.float32)
                    - c1 * lap_ref[...].astype(jnp.float32))


def _grain_kernel_fullrow(scal_ref, x_ref, out_ref, *, hw):
    # Fallback for HW % 128 != 0: x_ref is (TB, n_features*HW); channels are
    # picked with static lane slices (offset 0 and hw).
    c0 = scal_ref[0]
    c1 = scal_ref[1]
    df = x_ref[:, pl.ds(0, hw)].astype(jnp.float32)
    lap = x_ref[:, pl.ds(hw, hw)].astype(jnp.float32)
    out_ref[...] = c0 * df - c1 * lap


def _chip_generation():
    """Best-effort TPU generation (5, 6, 7, ...); 0 if unknown."""
    try:
        kind = jax.devices()[0].device_kind
    except Exception:
        return 0
    m = re.search(r"(\d+)", kind)
    return int(m.group(1)) if m else 0


def _choose_block_rows(n_rows, per_row_bytes, in_itemsize, is_v7plus):
    """Rows per tile from a per-step (in+out) VMEM budget.

    v5e/v6e: ~6 MiB/step (double-buffered ~12 MiB, under v5e's 16 MiB scoped
    default).  v7x+: ~12 MiB/step (amortizes per-step overhead against the
    faster HBM; double-buffered ~24 MiB, under 32 MiB scoped / 64 MiB phys).
    """
    target = (12 << 20) if is_v7plus else (6 << 20)
    tb = max(1, int(target // per_row_bytes))
    # Sublane packing multiple: 8 for f32, 16 for bf16/f16, 32 for int8/fp8.
    mult = 8 * max(1, 4 // max(1, in_itemsize))
    if tb < n_rows:
        tb = max(mult, (tb // mult) * mult)
        tb = min(tb, n_rows)
    else:
        tb = n_rows
    # v7x+: prefer a grid of >= 2 (both TensorCores) if halves stay >= ~2 MiB.
    if is_v7plus and tb == n_rows and n_rows > 1:
        half = -(-n_rows // 2)
        if half >= mult:
            half = (-(-half // mult)) * mult
        if half < n_rows and half * per_row_bytes >= (2 << 20):
            tb = half
    return int(tb)


def grain_growth_single_timestep(batch_features, L, kappa, dtime):
    """batch_features: (n_frames, n_grain, n_features, H, W).

    Returns deltas: (n_frames, n_grain, H, W) float32.
    """
    n_frames, n_grain, n_features, H, W = batch_features.shape
    assert n_features >= 2

    N = n_frames * n_grain
    HW = H * W
    FHW = n_features * HW

    # Free contiguous reshape (no HBM copy): channels lie contiguously per row.
    x2d = batch_features.reshape(N, FHW)
    isz = x2d.dtype.itemsize

    # Fold the scalar algebra on the host: out = c0*dfdeta - c1*lap_eta.
    absL = jnp.abs(jnp.asarray(L, jnp.float32)).reshape(())
    absKappa = jnp.abs(jnp.asarray(kappa, jnp.float32)).reshape(())
    c0 = -jnp.asarray(dtime, jnp.float32) * absL
    c1 = c0 * absKappa
    scalars = jnp.stack([c0, c1])  # (2,) f32 in SMEM

    is_v7plus = _chip_generation() >= 7
    lane_ok = (HW % 128 == 0)

    if lane_ok:
        per_row = HW * (2 * isz + 4)      # two channel reads + one f32 write
    else:
        per_row = FHW * isz + HW * 4      # full-row read + f32 write

    tb = _choose_block_rows(N, per_row, isz, is_v7plus)
    grid = (pl.cdiv(N, tb),)

    # Explicit scoped-VMEM sizing: double-buffered tiles + headroom, clamped
    # to a range that is safe on all generations (>= v5e 16 MiB default,
    # <= 30 MiB which is under v7x's 32 MiB scoped default / 64 MiB physical).
    vmem_need = 2 * tb * per_row
    vmem_limit = int(max(16 << 20, min(vmem_need + (4 << 20), 30 << 20)))
    cparams = pltpu.CompilerParams(
        dimension_semantics=("parallel",),
        vmem_limit_bytes=vmem_limit,
    )

    if lane_ok:
        # Per-channel column blocks: only channels 0 and 1 are DMA'd.
        out = pl.pallas_call(
            _grain_kernel_split,
            out_shape=jax.ShapeDtypeStruct((N, HW), jnp.float32),
            grid=grid,
            in_specs=[
                pl.BlockSpec(memory_space=pltpu.MemorySpace.SMEM),  # scalars
                pl.BlockSpec((tb, HW), lambda i: (i, 0)),           # dfdeta
                pl.BlockSpec((tb, HW), lambda i: (i, 1)),           # lap_eta
            ],
            out_specs=pl.BlockSpec((tb, HW), lambda i: (i, 0)),
            compiler_params=cparams,
        )(scalars, x2d, x2d)
    else:
        # TODO(synk): when HW % 128 != 0 and n_features > 2 this fallback still
        # streams the unused channels; a squeezed per-channel BlockSpec over the
        # (N, n_features, HW) view would avoid it.
        out = pl.pallas_call(
            functools.partial(_grain_kernel_fullrow, hw=HW),
            out_shape=jax.ShapeDtypeStruct((N, HW), jnp.float32),
            grid=grid,
            in_specs=[
                pl.BlockSpec(memory_space=pltpu.MemorySpace.SMEM),  # scalars
                pl.BlockSpec((tb, FHW), lambda i: (i, 0)),          # full row
            ],
            out_specs=pl.BlockSpec((tb, HW), lambda i: (i, 0)),
            compiler_params=cparams,
        )(scalars, x2d)

    # Free reshape back to the module's output layout.
    return out.reshape(n_frames, n_grain, H, W)


def _reference(batch_features, L, kappa, dtime):
    absL = jnp.abs(L)
    absKappa = jnp.abs(kappa)
    dfdeta = batch_features[:, :, 0].astype(jnp.float32)
    lap_eta = batch_features[:, :, 1].astype(jnp.float32)
    return -dtime * absL * (dfdeta - absKappa * lap_eta)


if __name__ == "__main__":
    key = jax.random.PRNGKey(0)
    k_x, k_L, k_kappa, k_x2 = jax.random.split(key, 4)

    # Module hyper-params (synthetic "param" values).
    n_frames, n_grain, n_features, H, W = 2, 4, 2, 16, 16
    dtime = jnp.float32(0.05)

    # Deterministic parameter init mirroring: randn(1) * 5 + 0.1
    L = jax.random.normal(k_L, (1,), dtype=jnp.float32) * 5.0 + 0.1
    kappa = jax.random.normal(k_kappa, (1,), dtype=jnp.float32) * 5.0 + 0.1

    batch_features = jax.random.normal(
        k_x, (n_frames, n_grain, n_features, H, W), dtype=jnp.float32)

    deltas = jax.block_until_ready(
        grain_growth_single_timestep(batch_features, L, kappa, dtime))
    ref = _reference(batch_features, L, kappa, dtime)
    assert deltas.shape == (n_frames, n_grain, H, W)
    assert jnp.allclose(deltas, ref, atol=1e-5, rtol=1e-5)

    # Second case: extra (unused) feature channels — only channels 0/1 are
    # streamed by the per-channel BlockSpecs; result must still match.
    bf2 = jax.random.normal(k_x2, (2, 3, 4, 16, 16), dtype=jnp.float32)
    d2 = jax.block_until_ready(grain_growth_single_timestep(bf2, L, kappa, dtime))
    r2 = _reference(bf2, L, kappa, dtime)
    assert d2.shape == (2, 3, 16, 16)
    assert jnp.allclose(d2, r2, atol=1e-5, rtol=1e-5)

    print("KERNEL_OK")
</pallas_src>

<mosaic_0001>
module attributes {stable_mosaic.version = 11 : i64} {
  func.func @_grain_kernel_split(%arg0: i32, %arg1: memref<2xf32, #tpu.memory_space<smem>>, %arg2: memref<8x256xf32, #tpu.memory_space<vmem>>, %arg3: memref<8x256xf32, #tpu.memory_space<vmem>>, %arg4: memref<8x256xf32, #tpu.memory_space<vmem>>) attributes {dimension_semantics = [#tpu.dimension_semantics<parallel>], iteration_bounds = array<i64: 1>, scalar_prefetch = 0 : i64, scratch_operands = 0 : i64, tpu.core_type = #tpu.core_type<tc>, window_params = [{transform_indices = @transform_0, window_bounds = array<i64: 2>}, {transform_indices = @transform_1, window_bounds = array<i64: 8, 256>}, {transform_indices = @transform_2, window_bounds = array<i64: 8, 256>}, {transform_indices = @transform_3, window_bounds = array<i64: 8, 256>}]} {
    %c0 = arith.constant 0 : index
    %0 = memref.load %arg1[%c0] : memref<2xf32, #tpu.memory_space<smem>>
    %c1 = arith.constant 1 : index
    %1 = memref.load %arg1[%c1] : memref<2xf32, #tpu.memory_space<smem>>
    %c0_0 = arith.constant 0 : index
    %c0_1 = arith.constant 0 : index
    %2 = vector.load %arg2[%c0_0, %c0_1] : memref<8x256xf32, #tpu.memory_space<vmem>>, vector<8x256xf32>
    %3 = vector.broadcast %0 : f32 to vector<8x256xf32>
    %4 = arith.mulf %3, %2 : vector<8x256xf32>
    %c0_2 = arith.constant 0 : index
    %c0_3 = arith.constant 0 : index
    %5 = vector.load %arg3[%c0_2, %c0_3] : memref<8x256xf32, #tpu.memory_space<vmem>>, vector<8x256xf32>
    %6 = vector.broadcast %1 : f32 to vector<8x256xf32>
    %7 = arith.mulf %6, %5 : vector<8x256xf32>
    %8 = arith.subf %4, %7 : vector<8x256xf32>
    %c0_4 = arith.constant 0 : index
    %c0_5 = arith.constant 0 : index
    %9 = vector.load %arg4[%c0_4, %c0_5] : memref<8x256xf32, #tpu.memory_space<vmem>>, vector<8x256xf32>
    tpu.vector_store %arg4[%c0_4, %c0_5], %8 {strides = array<i32>} : memref<8x256xf32, #tpu.memory_space<vmem>>, vector<8x256xf32>,
    return
  }
  func.func @transform_0(%arg0: i32) -> i32 {
    %c0_i32 = arith.constant 0 : i32
    %c0_i32_0 = arith.constant 0 : i32
    return %c0_i32 : i32
  }
  func.func @transform_1(%arg0: i32) -> (i32, i32) {
    %c0_i32 = arith.constant 0 : i32
    %c0_i32_0 = arith.constant 0 : i32
    return %arg0, %c0_i32 : i32, i32
  }
  func.func @transform_2(%arg0: i32) -> (i32, i32) {
    %c1_i32 = arith.constant 1 : i32
    %c0_i32 = arith.constant 0 : i32
    return %arg0, %c1_i32 : i32, i32
  }
  func.func @transform_3(%arg0: i32) -> (i32, i32) {
    %c0_i32 = arith.constant 0 : i32
    %c0_i32_0 = arith.constant 0 : i32
    return %arg0, %c0_i32 : i32, i32
  }
}

</mosaic_0001>

<bundles_post_ra>
// kernel: tpu_custom_call.1
= control target key start
LH: loop header
LB: loop body
LE: loop exit
PB: predicated region body
PF: predicated region fallthrough
CT: control target
= control target key end

     0   :  { %8 = vsyncpa [#allocation5], 0  ;;  %s254_s0 = inlined_call_operand.hbm [shape: f32[2], index: 0, kind: input, shape index: {}]   ;;  %s255_s1 = inlined_call_operand.hbm [shape: f32[8,512], index: 1, kind: input, shape index: {}]   ;;  %s256_s2 = inlined_call_operand.hbm [shape: f32[8,512], index: 2, kind: input, shape index: {}]   ;;  %s257_s3 = inlined_call_operand.hbm [shape: f32[8,256], index: 3, kind: output, shape index: {}]  }
   0x1   :  { %9 = vsyncpa [#allocation3], 0 }
   0x2   :  { %10 = vsyncpa [#allocation8], 0 }
   0x3   :  { %11 = vsyncpa [#allocation4], 0  ;;  %s89_s14 = scalar_lea.hbm %s254_s0, 16 }
   0x4   :  { %p90_p0 = scmp.ne.s32.totalorder %s254_s0, %s89_s14  ;;  %p93_p1 = scmp.lt.u32.totalorder %s89_s14, %s254_s0 }
   0x6   :  { %p95_p2 = pnand %p93_p1, %p90_p0 }
   0x8   :  { %98 = shalt.err (!%p95_p2)
}
   0x9   :  { %s176_s19 = smov [#allocation2]   ;;  %s177_s22 = smov [#allocation6]  }
   0xa   :  { %19 = dma.hbm_to_smem %s254_s0, 16, %s176_s19, [#allocation5]  }
   0xb   :  { %s26_s23 = sshll.u32 %s177_s22, 4  ;;  %s215_s26 = scalar_lea.hbm %s256_s2, 256  ;;  %s27_s23 = int_to_ptr.vmem [resolvable:$true] %s26_s23 }
   0xc   :  { %s99_s29 = scalar_lea.hbm %s255_s1, 256  ;;  %s101_s0 = scalar_lea.hbm %s255_s1, 512 }
   0xd   :  { %p100_p3 = scmp.ne.s32.totalorder %s255_s1, %s99_s29  ;;  %p102_p4 = scmp.lt.u32.totalorder %s101_s0, %s99_s29 }
   0xe   :  { %p103_p5 = scmp.lt.u32.totalorder %s99_s29, %s255_s1 }
  0x10   :  { %p104_p6 = por %p103_p5, %p102_p4 }
  0x12   :  { %p105_p7 = pnand %p104_p6, %p100_p3 }
  0x14   :  { %108 = shalt.err (!%p105_p7)
}
  0x15   :  { %s109_s9 = scalar_lea.vmem %s27_s23, 256  ;;  %p114_p9 = scmp.lt.s32.totalorder %s27_s23, %s27_s23 }
  0x16   :  { %p110_p8 = scmp.ne.s32.totalorder %s27_s23, %s109_s9  ;;  %p115_p10 = scmp.lt.s32.totalorder %s109_s9, %s109_s9 }
  0x18   :  { %p116_p11 = por %p115_p10, %p114_p9 }
  0x1a   :  { %p117_p12 = pnand %p116_p11, %p110_p8 }
  0x1c   :  { %120 = shalt.err (!%p117_p12)
}
  0x1d   :  { %29 = dma.hbm_to_vmem [thread:$0]  %s255_s1, 256, %s27_s23, [#allocation3]  }
  0x1e   :  { %s178_s12 = smov [#allocation7]   ;;  %s145_s16 = scalar_lea.hbm %s256_s2, 512 }
  0x1f   :  { %s37_s13 = sshll.u32 %s178_s12, 4  ;;  %p122_p13 = scmp.ne.s32.totalorder %s215_s26, %s145_s16  ;;  %s38_s13 = int_to_ptr.vmem [resolvable:$true] %s37_s13 }
  0x20   :  { %p124_p0 = scmp.lt.u32.totalorder %s215_s26, %s256_s2  ;;  %p125_p1 = scmp.lt.u32.totalorder %s145_s16, %s145_s16 }
  0x21   :  { %p127_p3 = scmp.lt.u32.totalorder %s145_s16, %s215_s26 }
  0x22   :  { %p126_p2 = por %p125_p1, %p124_p0 }
  0x24   :  { %p128_p4 = por %p127_p3, %p126_p2 }
  0x26   :  { %p129_p5 = pnand %p128_p4, %p122_p13 }
  0x28   :  { %132 = shalt.err (!%p129_p5)
}
  0x29   :  { %s133_s19 = scalar_lea.vmem %s38_s13, 256  ;;  %p138_p7 = scmp.lt.s32.totalorder %s38_s13, %s38_s13 }
  0x2a   :  { %p134_p6 = scmp.ne.s32.totalorder %s38_s13, %s133_s19  ;;  %p139_p8 = scmp.lt.s32.totalorder %s133_s19, %s133_s19 }
  0x2c   :  { %p140_p9 = por %p139_p8, %p138_p7 }
  0x2e   :  { %p141_p10 = pnand %p140_p9, %p134_p6 }
  0x30   :  { %144 = shalt.err (!%p141_p10)
}
  0x31   :  { %40 = dma.hbm_to_vmem [thread:$0]  %s215_s26, 256, %s38_s13, [#allocation8]  }
  0x32   :  { %168 = dma.done.wait [#allocation5], 16  }
  0x33   :  { %169 = vsyncadd [#allocation5], 4294967280 }
  0x34   :  { %170 = dma.done.wait [#allocation3], 256  }
  0x35   :  { %171 = vsyncadd [#allocation3], 4294967040 }
  0x36   :  { %172 = dma.done.wait [#allocation8], 256  }
  0x37   :  { %173 = vsyncadd [#allocation8], 4294967040 }
  0x38   :  { %50 = sfence }
  0x39   :  { %s51_s1 = sld [smem:[#allocation2]]  ;;  %s84_s2 = sld [smem:[#allocation2 + $0x1]]  ;;  %v53_v0 = vld [vmem:[#allocation6] sm:$0xff]  ;;  %v58_v1 = vld [vmem:[#allocation7] sm:$0xff]  ;;  %v54_v2 = vld [vmem:[#allocation6 + $0x8] sm:$0xff] }
  0x3a   :  { %v59_v3 = vld [vmem:[#allocation7 + $0x8] sm:$0xff]  ;;  %s179_s20 = smov [#allocation9]  }
  0x3b   :  { %s73_s21 = sshll.u32 %s179_s20, 4  ;;  %s74_s21 = int_to_ptr.vmem [resolvable:$true] %s73_s21 }
  0x3c   :  { %s146_s22 = scalar_lea.vmem %s74_s21, 256  ;;  %p151_p12 = scmp.lt.s32.totalorder %s74_s21, %s74_s21 }
  0x3d   :  { %p147_p11 = scmp.ne.s32.totalorder %s74_s21, %s146_s22  ;;  %p152_p13 = scmp.lt.s32.totalorder %s146_s22, %s146_s22 }
  0x3f   :  { %v55_v4 = vstv %s51_s1  ;;  %v60_v5 = vstv %s84_s2  ;;  %p153_p0 = por %p152_p13, %p151_p12 }
  0x40   :  { %v56_v6 = vmul.f32 %v55_v4, %v53_v0  ;;  %v61_v7 = vmul.f32 %v60_v5, %v58_v1  ;;  %v57_v8 = vmul.f32 %v55_v4, %v54_v2  ;;  %v62_v9 = vmul.f32 %v60_v5, %v59_v3 }
  0x41   :  { %p154_p1 = pnand %p153_p0, %p147_p11 }
  0x42   :  { %v63_v10 = vsub.f32 %v56_v6, %v61_v7  ;;  %v64_v11 = vsub.f32 %v57_v8, %v62_v9 }
  0x44   :  { %65 = vst [vmem:[#allocation9] sm:$0xff] %v63_v10  ;;  %66 = vst [vmem:[#allocation9 + $0x8] sm:$0xff] %v64_v11 }
  0x45   :  { %157 = shalt.err (!%p154_p1)
}
  0x46   :  { %s158_s25 = scalar_lea.hbm %s257_s3, 256 }
  0x47   :  { %p159_p2 = scmp.ne.s32.totalorder %s257_s3, %s158_s25  ;;  %p162_p3 = scmp.lt.u32.totalorder %s158_s25, %s257_s3 }
  0x49   :  { %p164_p4 = pnand %p162_p3, %p159_p2 }
  0x4b   :  { %167 = shalt.err (!%p164_p4)
}
  0x4c   :  { %76 = dma.vmem_to_hbm [thread:$0]  %s74_s21, 256, %s257_s3, [#allocation4]  }
  0x4d   :  { %174 = dma.done.wait [#allocation4], 256  }
  0x4e   :  { %175 = vsyncadd [#allocation4], 4294967040 }
  0x4f   :  { %80 = vsyncpa [#allocation3], 1 }
  0x50   :  { %81 = vsyncpa [#allocation8], 1 }
  0x51   :  { %82 = vsyncpa [#allocation4], 1 }
  0x52   :  { %83 = vsyncpa [#allocation5], 1 }

</bundles_post_ra>
